<compile_context>
chip_gen: v6e
topology: v6e:2x2x1
jax: 0.10.0
libtpu: 0.0.40
codegen_flags: <defaults>
</compile_context>

<pallas_src>
import jax
import jax.numpy as jnp
import numpy as np
from jax import lax
from jax.experimental import pallas as pl
from jax.experimental.pallas import tpu as pltpu


def encoder_gru_kernel(gi_ref, w_hh_ref, b_hhn_ref, out_ref, hidden_ref, h_scratch):
    """One time-chunk of the GRU recurrence; h is carried across chunks in scratch.

    gi_ref     : (T_CHUNK, B, 3H) bf16  precomputed x_t @ W_ih + b_ih (+ b_hh for r|z)
    w_hh_ref   : (H, 3H)          bf16  hidden->hidden weights (pre-transposed)
    b_hhn_ref  : (1, H)           f32   n-gate hidden bias (must stay under r*)
    out_ref    : (T_CHUNK, B, H)  f32   GRU outputs for this chunk, time-major
    hidden_ref : (1, B, H)        f32   final hidden state (resident across grid)
    h_scratch  : (B, H)           f32   hidden-state carry across grid steps
    """
    t_chunk, B, _ = gi_ref.shape
    H = w_hh_ref.shape[0]

    @pl.when(pl.program_id(0) == 0)
    def _():
        h_scratch[...] = jnp.zeros_like(h_scratch)

    w_hh = w_hh_ref[...]                                         # bf16, VMEM-resident
    # Hoisted broadcast (JAX does not CSE broadcast_in_dim inside the loop).
    b_hh_n = jnp.broadcast_to(b_hhn_ref[...], (B, H))            # (B, H) f32

    def step(t, h):
        gi = gi_ref[t].astype(jnp.float32)                       # (B, 3H) f32
        # bf16 MXU operands, f32 accumulation; h carry stays f32.
        gh = jnp.dot(h.astype(jnp.bfloat16), w_hh,
                     preferred_element_type=jnp.float32)         # (B, 3H) f32
        r = jax.nn.sigmoid(gi[:, 0 * H:1 * H] + gh[:, 0 * H:1 * H])
        z = jax.nn.sigmoid(gi[:, 1 * H:2 * H] + gh[:, 1 * H:2 * H])
        n = jnp.tanh(gi[:, 2 * H:3 * H] + r * (gh[:, 2 * H:3 * H] + b_hh_n))
        h_new = (1.0 - z) * n + z * h
        out_ref[t] = h_new.astype(out_ref.dtype)
        return h_new

    h0 = h_scratch[...]
    # Bounded unroll: t_chunk is small (<= 8), so full unroll is safe here.
    h_last = lax.fori_loop(0, t_chunk, step, h0, unroll=min(t_chunk, 8))
    h_scratch[...] = h_last

    # hidden_ref block index is constant across the grid -> VMEM-resident;
    # only the final value is written back to HBM.
    hidden_ref[0] = h_last.astype(hidden_ref.dtype)


def encoder_rnn_forward(ids, emb, w_ih, w_hh, b_ih, b_hh, *, t_chunk=4):
    """ids: (B, T) int32. Returns (output (B, T, H), hidden (1, B, H))."""
    B, T = ids.shape
    V, H = emb.shape
    assert H % 128 == 0, "pad H to a multiple of 128 for lane-aligned gate slices"
    if T % t_chunk != 0:
        t_chunk = 1  # fallback; toy shapes below keep T % t_chunk == 0
    n_chunks = T // t_chunk

    # --- Non-recurrent phase in XLA (time-major) ------------------------------
    x_tm = emb[ids.T]                                                     # (T, B, H)
    gi_all = (x_tm.reshape(T * B, H) @ w_ih).reshape(T, B, 3 * H) + b_ih  # (T, B, 3H)
    # Fold r/z portions of b_hh into the precompute; the n portion must stay
    # inside the kernel under the r* multiply (torch.nn.GRU semantics).
    b_hh_rz = jnp.concatenate([b_hh[:, :2 * H], jnp.zeros((1, H), b_hh.dtype)], axis=1)
    gi_all = (gi_all + b_hh_rz).astype(jnp.bfloat16)                      # bf16 DMA
    w_hh_bf = w_hh.astype(jnp.bfloat16)                                   # bf16 MXU RHS
    b_hh_n = b_hh[:, 2 * H:3 * H]                                         # (1, H) f32

    out_tm, hidden = pl.pallas_call(
        encoder_gru_kernel,
        out_shape=(
            jax.ShapeDtypeStruct((T, B, H), jnp.float32),          # time-major output
            jax.ShapeDtypeStruct((1, B, H), jnp.float32),          # final hidden
        ),
        grid_spec=pltpu.PrefetchScalarGridSpec(
            num_scalar_prefetch=0,
            grid=(n_chunks,),                                      # time-chunked grid
            in_specs=[
                pl.BlockSpec((t_chunk, B, 3 * H), lambda i: (i, 0, 0)),  # gi chunk
                pl.BlockSpec((H, 3 * H), lambda i: (0, 0)),              # W_hh^T (resident)
                pl.BlockSpec((1, H), lambda i: (0, 0)),                  # b_hh (n gate)
            ],
            out_specs=[
                pl.BlockSpec((t_chunk, B, H), lambda i: (i, 0, 0)),      # output chunk
                pl.BlockSpec((1, B, H), lambda i: (0, 0, 0)),            # final hidden
            ],
            scratch_shapes=[pltpu.VMEM((B, H), jnp.float32)],            # h carry
        ),
        compiler_params=pltpu.CompilerParams(
            dimension_semantics=("arbitrary",),                    # h carry => serial
            vmem_limit_bytes=32 * 1024 * 1024,
        ),
    )(gi_all, w_hh_bf, b_hh_n)

    output = jnp.transpose(out_tm, (1, 0, 2))                      # back to (B, T, H)
    return output, hidden


def encoder_rnn_reference(ids, emb, w_ih, w_hh, b_ih, b_hh):
    """Pure-JAX reference (PyTorch GRU semantics, batch_first, h0 = 0), all f32."""
    B, T = ids.shape
    V, H = emb.shape
    x = emb[ids]                                                   # (B, T, H)

    def step(h, x_t):
        gi = x_t @ w_ih + b_ih[0]
        gh = h @ w_hh + b_hh[0]
        r = jax.nn.sigmoid(gi[:, :H] + gh[:, :H])
        z = jax.nn.sigmoid(gi[:, H:2 * H] + gh[:, H:2 * H])
        n = jnp.tanh(gi[:, 2 * H:] + r * gh[:, 2 * H:])
        h_new = (1.0 - z) * n + z * h
        return h_new, h_new

    h0 = jnp.zeros((B, H), jnp.float32)
    h_last, ys = lax.scan(step, h0, jnp.swapaxes(x, 0, 1))
    return jnp.swapaxes(ys, 0, 1), h_last[None]


if __name__ == "__main__":
    B, T = 8, 8          # batch, sequence length
    V, H = 32, 128       # input_size (vocab), hidden_size

    key = jax.random.PRNGKey(0)
    k_ids, k_emb, k_wih, k_whh, k_bih, k_bhh = jax.random.split(key, 6)

    ids = jax.random.randint(k_ids, (B, T), 0, V, dtype=jnp.int32)

    # Deterministic parameter init (shapes per nn.Embedding / nn.GRU).
    bound = 1.0 / np.sqrt(H)
    emb = jax.random.normal(k_emb, (V, H), jnp.float32)                       # N(0,1) like nn.Embedding
    w_ih = jax.random.uniform(k_wih, (H, 3 * H), jnp.float32, -bound, bound)  # (W_ih)^T, gate order r|z|n
    w_hh = jax.random.uniform(k_whh, (H, 3 * H), jnp.float32, -bound, bound)  # (W_hh)^T
    b_ih = jax.random.uniform(k_bih, (1, 3 * H), jnp.float32, -bound, bound)
    b_hh = jax.random.uniform(k_bhh, (1, 3 * H), jnp.float32, -bound, bound)

    out, hidden = jax.block_until_ready(
        encoder_rnn_forward(ids, emb, w_ih, w_hh, b_ih, b_hh, t_chunk=4)
    )

    out_ref, hidden_ref = encoder_rnn_reference(ids, emb, w_ih, w_hh, b_ih, b_hh)
    # bf16 gi_all / bf16 MXU operands (f32 accumulate + f32 h carry) => looser tolerance.
    np.testing.assert_allclose(np.asarray(out), np.asarray(out_ref), rtol=2e-2, atol=2e-2)
    np.testing.assert_allclose(np.asarray(hidden), np.asarray(hidden_ref), rtol=2e-2, atol=2e-2)

    assert out.shape == (B, T, H) and hidden.shape == (1, B, H)
    print("KERNEL_OK")
</pallas_src>

<mosaic_0001>
module attributes {stable_mosaic.version = 11 : i64} {
  func.func @encoder_gru_kernel(%arg0: i32, %arg1: memref<4x8x384xbf16, #tpu.memory_space<vmem>>, %arg2: memref<128x384xbf16, #tpu.memory_space<vmem>>, %arg3: memref<1x128xf32, #tpu.memory_space<vmem>>, %arg4: memref<4x8x128xf32, #tpu.memory_space<vmem>>, %arg5: memref<1x8x128xf32, #tpu.memory_space<vmem>>, %arg6: memref<8x128xf32, #tpu.memory_space<vmem>>) attributes {dimension_semantics = [#tpu.dimension_semantics<arbitrary>], iteration_bounds = array<i64: 2>, scalar_prefetch = 0 : i64, scratch_operands = 1 : i64, tpu.core_type = #tpu.core_type<tc>, window_params = [{transform_indices = @transform_0, window_bounds = array<i64: 4, 8, 384>}, {pipeline_mode = #tpu.pipeline_mode<synchronous>, transform_indices = @transform_1, window_bounds = array<i64: 128, 384>}, {pipeline_mode = #tpu.pipeline_mode<synchronous>, transform_indices = @transform_2, window_bounds = array<i64: 1, 128>}, {transform_indices = @transform_3, window_bounds = array<i64: 4, 8, 128>}, {pipeline_mode = #tpu.pipeline_mode<synchronous>, transform_indices = @transform_4, window_bounds = array<i64: 1, 8, 128>}]} {
    %c0_i32 = arith.constant 0 : i32
    %0 = arith.cmpi eq, %arg0, %c0_i32 : i32
    %1 = arith.extui %0 : i1 to i32
    %c0_i32_0 = arith.constant 0 : i32
    %2 = arith.cmpi ne, %1, %c0_i32_0 : i32
    scf.if %2 {
      %cst_43 = arith.constant 0.000000e+00 : f32
      %160 = vector.broadcast %cst_43 : f32 to vector<8x128xf32>
      %c0_44 = arith.constant 0 : index
      %c0_45 = arith.constant 0 : index
      %161 = vector.load %arg6[%c0_44, %c0_45] : memref<8x128xf32, #tpu.memory_space<vmem>>, vector<8x128xf32>
      tpu.vector_store %arg6[%c0_44, %c0_45], %160 {strides = array<i32>} : memref<8x128xf32, #tpu.memory_space<vmem>>, vector<8x128xf32>,
    } else {
    }
    %c0 = arith.constant 0 : index
    %c0_1 = arith.constant 0 : index
    %3 = vector.load %arg2[%c0, %c0_1] : memref<128x384xbf16, #tpu.memory_space<vmem>>, vector<128x384xbf16>
    %c0_2 = arith.constant 0 : index
    %c0_3 = arith.constant 0 : index
    %4 = vector.load %arg3[%c0_2, %c0_3] : memref<1x128xf32, #tpu.memory_space<vmem>>, vector<1x128xf32>
    %5 = vector.shape_cast %4 : vector<1x128xf32> to vector<1x128xf32>
    %6 = vector.broadcast %5 : vector<1x128xf32> to vector<8x128xf32>
    %c0_4 = arith.constant 0 : index
    %c0_5 = arith.constant 0 : index
    %7 = vector.load %arg6[%c0_4, %c0_5] : memref<8x128xf32, #tpu.memory_space<vmem>>, vector<8x128xf32>
    %c0_i32_6 = arith.constant 0 : i32
    %8 = arith.index_cast %c0_i32_6 : i32 to index
    %c0_7 = arith.constant 0 : index
    %c0_8 = arith.constant 0 : index
    %9 = vector.load %arg1[%8, %c0_7, %c0_8] : memref<4x8x384xbf16, #tpu.memory_space<vmem>>, vector<1x8x384xbf16>
    %10 = vector.shape_cast %9 : vector<1x8x384xbf16> to vector<8x384xbf16>
    %11 = arith.extf %10 : vector<8x384xbf16> to vector<8x384xf32>
    %12 = arith.truncf %7 : vector<8x128xf32> to vector<8x128xbf16>
    %cst = arith.constant dense<0.000000e+00> : vector<8x384xf32>
    %13 = tpu.matmul %12, %3, %cst {dimension_numbers = #tpu.dot_dimension_numbers<[1], [0], [0], [1], [0, 0, 1, 1], [], []>} : vector<8x128xbf16>, vector<128x384xbf16>, vector<8x384xf32> -> vector<8x384xf32>
    %14 = vector.extract_strided_slice %11 {offsets = [0, 0], sizes = [8, 128], strides = [1, 1]} : vector<8x384xf32> to vector<8x128xf32>
    %15 = vector.extract_strided_slice %13 {offsets = [0, 0], sizes = [8, 128], strides = [1, 1]} : vector<8x384xf32> to vector<8x128xf32>
    %16 = arith.addf %14, %15 : vector<8x128xf32>
    %17 = arith.negf %16 : vector<8x128xf32>
    %18 = math.exp %17 : vector<8x128xf32>
    %cst_9 = arith.constant 1.000000e+00 : f32
    %19 = vector.broadcast %cst_9 : f32 to vector<8x128xf32>
    %20 = arith.addf %19, %18 : vector<8x128xf32>
    %21 = arith.divf %19, %20 : vector<8x128xf32>
    %22 = vector.extract_strided_slice %11 {offsets = [0, 128], sizes = [8, 128], strides = [1, 1]} : vector<8x384xf32> to vector<8x128xf32>
    %23 = vector.extract_strided_slice %13 {offsets = [0, 128], sizes = [8, 128], strides = [1, 1]} : vector<8x384xf32> to vector<8x128xf32>
    %24 = arith.addf %22, %23 : vector<8x128xf32>
    %25 = arith.negf %24 : vector<8x128xf32>
    %26 = math.exp %25 : vector<8x128xf32>
    %cst_10 = arith.constant 1.000000e+00 : f32
    %27 = vector.broadcast %cst_10 : f32 to vector<8x128xf32>
    %28 = arith.addf %27, %26 : vector<8x128xf32>
    %29 = arith.divf %27, %28 : vector<8x128xf32>
    %30 = vector.extract_strided_slice %11 {offsets = [0, 256], sizes = [8, 128], strides = [1, 1]} : vector<8x384xf32> to vector<8x128xf32>
    %31 = vector.extract_strided_slice %13 {offsets = [0, 256], sizes = [8, 128], strides = [1, 1]} : vector<8x384xf32> to vector<8x128xf32>
    %32 = arith.addf %31, %6 : vector<8x128xf32>
    %33 = arith.mulf %21, %32 : vector<8x128xf32>
    %34 = arith.addf %30, %33 : vector<8x128xf32>
    %35 = math.tanh %34 : vector<8x128xf32>
    %cst_11 = arith.constant 1.000000e+00 : f32
    %36 = vector.broadcast %cst_11 : f32 to vector<8x128xf32>
    %37 = arith.subf %36, %29 : vector<8x128xf32>
    %38 = arith.mulf %37, %35 : vector<8x128xf32>
    %39 = arith.mulf %29, %7 : vector<8x128xf32>
    %40 = arith.addf %38, %39 : vector<8x128xf32>
    %41 = arith.index_cast %c0_i32_6 : i32 to index
    %c0_12 = arith.constant 0 : index
    %c0_13 = arith.constant 0 : index
    %42 = vector.load %arg4[%41, %c0_12, %c0_13] : memref<4x8x128xf32, #tpu.memory_space<vmem>>, vector<1x8x128xf32>
    %43 = vector.shape_cast %42 : vector<1x8x128xf32> to vector<8x128xf32>
    %44 = vector.shape_cast %40 : vector<8x128xf32> to vector<1x8x128xf32>
    tpu.vector_store %arg4[%41, %c0_12, %c0_13], %44 {strides = array<i32>} : memref<4x8x128xf32, #tpu.memory_space<vmem>>, vector<1x8x128xf32>,
    %c1_i32 = arith.constant 1 : i32
    %45 = arith.index_cast %c1_i32 : i32 to index
    %c0_14 = arith.constant 0 : index
    %c0_15 = arith.constant 0 : index
    %46 = vector.load %arg1[%45, %c0_14, %c0_15] : memref<4x8x384xbf16, #tpu.memory_space<vmem>>, vector<1x8x384xbf16>
    %47 = vector.shape_cast %46 : vector<1x8x384xbf16> to vector<8x384xbf16>
    %48 = arith.extf %47 : vector<8x384xbf16> to vector<8x384xf32>
    %49 = arith.truncf %40 : vector<8x128xf32> to vector<8x128xbf16>
    %cst_16 = arith.constant dense<0.000000e+00> : vector<8x384xf32>
    %50 = tpu.matmul %49, %3, %cst_16 {dimension_numbers = #tpu.dot_dimension_numbers<[1], [0], [0], [1], [0, 0, 1, 1], [], []>} : vector<8x128xbf16>, vector<128x384xbf16>, vector<8x384xf32> -> vector<8x384xf32>
    %51 = vector.extract_strided_slice %48 {offsets = [0, 0], sizes = [8, 128], strides = [1, 1]} : vector<8x384xf32> to vector<8x128xf32>
    %52 = vector.extract_strided_slice %50 {offsets = [0, 0], sizes = [8, 128], strides = [1, 1]} : vector<8x384xf32> to vector<8x128xf32>
    %53 = arith.addf %51, %52 : vector<8x128xf32>
    %54 = arith.negf %53 : vector<8x128xf32>
    %55 = math.exp %54 : vector<8x128xf32>
    %cst_17 = arith.constant 1.000000e+00 : f32
    %56 = vector.broadcast %cst_17 : f32 to vector<8x128xf32>
    %57 = arith.addf %56, %55 : vector<8x128xf32>
    %58 = arith.divf %56, %57 : vector<8x128xf32>
    %59 = vector.extract_strided_slice %48 {offsets = [0, 128], sizes = [8, 128], strides = [1, 1]} : vector<8x384xf32> to vector<8x128xf32>
    %60 = vector.extract_strided_slice %50 {offsets = [0, 128], sizes = [8, 128], strides = [1, 1]} : vector<8x384xf32> to vector<8x128xf32>
    %61 = arith.addf %59, %60 : vector<8x128xf32>
    %62 = arith.negf %61 : vector<8x128xf32>
    %63 = math.exp %62 : vector<8x128xf32>
    %cst_18 = arith.constant 1.000000e+00 : f32
    %64 = vector.broadcast %cst_18 : f32 to vector<8x128xf32>
    %65 = arith.addf %64, %63 : vector<8x128xf32>
    %66 = arith.divf %64, %65 : vector<8x128xf32>
    %67 = vector.extract_strided_slice %48 {offsets = [0, 256], sizes = [8, 128], strides = [1, 1]} : vector<8x384xf32> to vector<8x128xf32>
    %68 = vector.extract_strided_slice %50 {offsets = [0, 256], sizes = [8, 128], strides = [1, 1]} : vector<8x384xf32> to vector<8x128xf32>
    %69 = arith.addf %68, %6 : vector<8x128xf32>
    %70 = arith.mulf %58, %69 : vector<8x128xf32>
    %71 = arith.addf %67, %70 : vector<8x128xf32>
    %72 = math.tanh %71 : vector<8x128xf32>
    %cst_19 = arith.constant 1.000000e+00 : f32
    %73 = vector.broadcast %cst_19 : f32 to vector<8x128xf32>
    %74 = arith.subf %73, %66 : vector<8x128xf32>
    %75 = arith.mulf %74, %72 : vector<8x128xf32>
    %76 = arith.mulf %66, %40 : vector<8x128xf32>
    %77 = arith.addf %75, %76 : vector<8x128xf32>
    %78 = arith.index_cast %c1_i32 : i32 to index
    %c0_20 = arith.constant 0 : index
    %c0_21 = arith.constant 0 : index
    %79 = vector.load %arg4[%78, %c0_20, %c0_21] : memref<4x8x128xf32, #tpu.memory_space<vmem>>, vector<1x8x128xf32>
    %80 = vector.shape_cast %79 : vector<1x8x128xf32> to vector<8x128xf32>
    %81 = vector.shape_cast %77 : vector<8x128xf32> to vector<1x8x128xf32>
    tpu.vector_store %arg4[%78, %c0_20, %c0_21], %81 {strides = array<i32>} : memref<4x8x128xf32, #tpu.memory_space<vmem>>, vector<1x8x128xf32>,
    %c2_i32 = arith.constant 2 : i32
    %82 = arith.index_cast %c2_i32 : i32 to index
    %c0_22 = arith.constant 0 : index
    %c0_23 = arith.constant 0 : index
    %83 = vector.load %arg1[%82, %c0_22, %c0_23] : memref<4x8x384xbf16, #tpu.memory_space<vmem>>, vector<1x8x384xbf16>
    %84 = vector.shape_cast %83 : vector<1x8x384xbf16> to vector<8x384xbf16>
    %85 = arith.extf %84 : vector<8x384xbf16> to vector<8x384xf32>
    %86 = arith.truncf %77 : vector<8x128xf32> to vector<8x128xbf16>
    %cst_24 = arith.constant dense<0.000000e+00> : vector<8x384xf32>
    %87 = tpu.matmul %86, %3, %cst_24 {dimension_numbers = #tpu.dot_dimension_numbers<[1], [0], [0], [1], [0, 0, 1, 1], [], []>} : vector<8x128xbf16>, vector<128x384xbf16>, vector<8x384xf32> -> vector<8x384xf32>
    %88 = vector.extract_strided_slice %85 {offsets = [0, 0], sizes = [8, 128], strides = [1, 1]} : vector<8x384xf32> to vector<8x128xf32>
    %89 = vector.extract_strided_slice %87 {offsets = [0, 0], sizes = [8, 128], strides = [1, 1]} : vector<8x384xf32> to vector<8x128xf32>
    %90 = arith.addf %88, %89 : vector<8x128xf32>
    %91 = arith.negf %90 : vector<8x128xf32>
    %92 = math.exp %91 : vector<8x128xf32>
    %cst_25 = arith.constant 1.000000e+00 : f32
    %93 = vector.broadcast %cst_25 : f32 to vector<8x128xf32>
    %94 = arith.addf %93, %92 : vector<8x128xf32>
    %95 = arith.divf %93, %94 : vector<8x128xf32>
    %96 = vector.extract_strided_slice %85 {offsets = [0, 128], sizes = [8, 128], strides = [1, 1]} : vector<8x384xf32> to vector<8x128xf32>
    %97 = vector.extract_strided_slice %87 {offsets = [0, 128], sizes = [8, 128], strides = [1, 1]} : vector<8x384xf32> to vector<8x128xf32>
    %98 = arith.addf %96, %97 : vector<8x128xf32>
    %99 = arith.negf %98 : vector<8x128xf32>
    %100 = math.exp %99 : vector<8x128xf32>
    %cst_26 = arith.constant 1.000000e+00 : f32
    %101 = vector.broadcast %cst_26 : f32 to vector<8x128xf32>
    %102 = arith.addf %101, %100 : vector<8x128xf32>
    %103 = arith.divf %101, %102 : vector<8x128xf32>
    %104 = vector.extract_strided_slice %85 {offsets = [0, 256], sizes = [8, 128], strides = [1, 1]} : vector<8x384xf32> to vector<8x128xf32>
    %105 = vector.extract_strided_slice %87 {offsets = [0, 256], sizes = [8, 128], strides = [1, 1]} : vector<8x384xf32> to vector<8x128xf32>
    %106 = arith.addf %105, %6 : vector<8x128xf32>
    %107 = arith.mulf %95, %106 : vector<8x128xf32>
    %108 = arith.addf %104, %107 : vector<8x128xf32>
    %109 = math.tanh %108 : vector<8x128xf32>
    %cst_27 = arith.constant 1.000000e+00 : f32
    %110 = vector.broadcast %cst_27 : f32 to vector<8x128xf32>
    %111 = arith.subf %110, %103 : vector<8x128xf32>
    %112 = arith.mulf %111, %109 : vector<8x128xf32>
    %113 = arith.mulf %103, %77 : vector<8x128xf32>
    %114 = arith.addf %112, %113 : vector<8x128xf32>
    %115 = arith.index_cast %c2_i32 : i32 to index
    %c0_28 = arith.constant 0 : index
    %c0_29 = arith.constant 0 : index
    %116 = vector.load %arg4[%115, %c0_28, %c0_29] : memref<4x8x128xf32, #tpu.memory_space<vmem>>, vector<1x8x128xf32>
    %117 = vector.shape_cast %116 : vector<1x8x128xf32> to vector<8x128xf32>
    %118 = vector.shape_cast %114 : vector<8x128xf32> to vector<1x8x128xf32>
    tpu.vector_store %arg4[%115, %c0_28, %c0_29], %118 {strides = array<i32>} : memref<4x8x128xf32, #tpu.memory_space<vmem>>, vector<1x8x128xf32>,
    %c3_i32 = arith.constant 3 : i32
    %119 = arith.index_cast %c3_i32 : i32 to index
    %c0_30 = arith.constant 0 : index
    %c0_31 = arith.constant 0 : index
    %120 = vector.load %arg1[%119, %c0_30, %c0_31] : memref<4x8x384xbf16, #tpu.memory_space<vmem>>, vector<1x8x384xbf16>
    %121 = vector.shape_cast %120 : vector<1x8x384xbf16> to vector<8x384xbf16>
    %122 = arith.extf %121 : vector<8x384xbf16> to vector<8x384xf32>
    %123 = arith.truncf %114 : vector<8x128xf32> to vector<8x128xbf16>
    %cst_32 = arith.constant dense<0.000000e+00> : vector<8x384xf32>
    %124 = tpu.matmul %123, %3, %cst_32 {dimension_numbers = #tpu.dot_dimension_numbers<[1], [0], [0], [1], [0, 0, 1, 1], [], []>} : vector<8x128xbf16>, vector<128x384xbf16>, vector<8x384xf32> -> vector<8x384xf32>
    %125 = vector.extract_strided_slice %122 {offsets = [0, 0], sizes = [8, 128], strides = [1, 1]} : vector<8x384xf32> to vector<8x128xf32>
    %126 = vector.extract_strided_slice %124 {offsets = [0, 0], sizes = [8, 128], strides = [1, 1]} : vector<8x384xf32> to vector<8x128xf32>
    %127 = arith.addf %125, %126 : vector<8x128xf32>
    %128 = arith.negf %127 : vector<8x128xf32>
    %129 = math.exp %128 : vector<8x128xf32>
    %cst_33 = arith.constant 1.000000e+00 : f32
    %130 = vector.broadcast %cst_33 : f32 to vector<8x128xf32>
    %131 = arith.addf %130, %129 : vector<8x128xf32>
    %132 = arith.divf %130, %131 : vector<8x128xf32>
    %133 = vector.extract_strided_slice %122 {offsets = [0, 128], sizes = [8, 128], strides = [1, 1]} : vector<8x384xf32> to vector<8x128xf32>
    %134 = vector.extract_strided_slice %124 {offsets = [0, 128], sizes = [8, 128], strides = [1, 1]} : vector<8x384xf32> to vector<8x128xf32>
    %135 = arith.addf %133, %134 : vector<8x128xf32>
    %136 = arith.negf %135 : vector<8x128xf32>
    %137 = math.exp %136 : vector<8x128xf32>
    %cst_34 = arith.constant 1.000000e+00 : f32
    %138 = vector.broadcast %cst_34 : f32 to vector<8x128xf32>
    %139 = arith.addf %138, %137 : vector<8x128xf32>
    %140 = arith.divf %138, %139 : vector<8x128xf32>
    %141 = vector.extract_strided_slice %122 {offsets = [0, 256], sizes = [8, 128], strides = [1, 1]} : vector<8x384xf32> to vector<8x128xf32>
    %142 = vector.extract_strided_slice %124 {offsets = [0, 256], sizes = [8, 128], strides = [1, 1]} : vector<8x384xf32> to vector<8x128xf32>
    %143 = arith.addf %142, %6 : vector<8x128xf32>
    %144 = arith.mulf %132, %143 : vector<8x128xf32>
    %145 = arith.addf %141, %144 : vector<8x128xf32>
    %146 = math.tanh %145 : vector<8x128xf32>
    %cst_35 = arith.constant 1.000000e+00 : f32
    %147 = vector.broadcast %cst_35 : f32 to vector<8x128xf32>
    %148 = arith.subf %147, %140 : vector<8x128xf32>
    %149 = arith.mulf %148, %146 : vector<8x128xf32>
    %150 = arith.mulf %140, %114 : vector<8x128xf32>
    %151 = arith.addf %149, %150 : vector<8x128xf32>
    %152 = arith.index_cast %c3_i32 : i32 to index
    %c0_36 = arith.constant 0 : index
    %c0_37 = arith.constant 0 : index
    %153 = vector.load %arg4[%152, %c0_36, %c0_37] : memref<4x8x128xf32, #tpu.memory_space<vmem>>, vector<1x8x128xf32>
    %154 = vector.shape_cast %153 : vector<1x8x128xf32> to vector<8x128xf32>
    %155 = vector.shape_cast %151 : vector<8x128xf32> to vector<1x8x128xf32>
    tpu.vector_store %arg4[%152, %c0_36, %c0_37], %155 {strides = array<i32>} : memref<4x8x128xf32, #tpu.memory_space<vmem>>, vector<1x8x128xf32>,
    %c4_i32 = arith.constant 4 : i32
    %c0_38 = arith.constant 0 : index
    %c0_39 = arith.constant 0 : index
    %156 = vector.load %arg6[%c0_38, %c0_39] : memref<8x128xf32, #tpu.memory_space<vmem>>, vector<8x128xf32>
    tpu.vector_store %arg6[%c0_38, %c0_39], %151 {strides = array<i32>} : memref<8x128xf32, #tpu.memory_space<vmem>>, vector<8x128xf32>,
    %c0_40 = arith.constant 0 : index
    %c0_41 = arith.constant 0 : index
    %c0_42 = arith.constant 0 : index
    %157 = vector.load %arg5[%c0_40, %c0_41, %c0_42] : memref<1x8x128xf32, #tpu.memory_space<vmem>>, vector<1x8x128xf32>
    %158 = vector.shape_cast %157 : vector<1x8x128xf32> to vector<8x128xf32>
    %159 = vector.shape_cast %151 : vector<8x128xf32> to vector<1x8x128xf32>
    tpu.vector_store %arg5[%c0_40, %c0_41, %c0_42], %159 {strides = array<i32>} : memref<1x8x128xf32, #tpu.memory_space<vmem>>, vector<1x8x128xf32>,
    return
  }
  func.func @transform_0(%arg0: i32) -> (i32, i32, i32) {
    %c0_i32 = arith.constant 0 : i32
    %c0_i32_0 = arith.constant 0 : i32
    %c0_i32_1 = arith.constant 0 : i32
    return %arg0, %c0_i32, %c0_i32_0 : i32, i32, i32
  }
  func.func @transform_1(%arg0: i32) -> (i32, i32) {
    %c0_i32 = arith.constant 0 : i32
    %c0_i32_0 = arith.constant 0 : i32
    %c0_i32_1 = arith.constant 0 : i32
    return %c0_i32, %c0_i32_0 : i32, i32
  }
  func.func @transform_2(%arg0: i32) -> (i32, i32) {
    %c0_i32 = arith.constant 0 : i32
    %c0_i32_0 = arith.constant 0 : i32
    %c0_i32_1 = arith.constant 0 : i32
    return %c0_i32, %c0_i32_0 : i32, i32
  }
  func.func @transform_3(%arg0: i32) -> (i32, i32, i32) {
    %c0_i32 = arith.constant 0 : i32
    %c0_i32_0 = arith.constant 0 : i32
    %c0_i32_1 = arith.constant 0 : i32
    return %arg0, %c0_i32, %c0_i32_0 : i32, i32, i32
  }
  func.func @transform_4(%arg0: i32) -> (i32, i32, i32) {
    %c0_i32 = arith.constant 0 : i32
    %c0_i32_0 = arith.constant 0 : i32
    %c0_i32_1 = arith.constant 0 : i32
    %c0_i32_2 = arith.constant 0 : i32
    return %c0_i32, %c0_i32_0, %c0_i32_1 : i32, i32, i32
  }
}

</mosaic_0001>

<bundles_post_ra>
// kernel: tpu_custom_call.1
= control target key start
LH: loop header
LB: loop body
LE: loop exit
PB: predicated region body
PF: predicated region fallthrough
CT: control target
= control target key end

     0   :  { %10 = vsyncpa [#allocation4], 0  ;;  %s1925_s0 = inlined_call_operand.hbm [shape: bf16[8,8,384], index: 0, kind: input, shape index: {}]   ;;  %s1926_s1 = inlined_call_operand.hbm [shape: bf16[128,384], index: 1, kind: input, shape index: {}]   ;;  %s1927_s2 = inlined_call_operand.vmem [shape: f32[1,128], index: 2, kind: input, shape index: {}]   ;;  %s1928_s3 = inlined_call_operand.hbm [shape: f32[8,8,128], index: 3, kind: output, shape index: {0}]   ;;  %s1929_s4 = inlined_call_operand.hbm [shape: f32[1,8,128], index: 4, kind: output, shape index: {1}]  }
   0x1   :  { %12 = vsyncpa [#allocation4 + $0x1], 0 }
   0x2   :  { %13 = vsyncpa [#allocation7], 0 }
   0x3   :  { %14 = vsyncpa [#allocation5], 0 }
   0x4   :  { %16 = vsyncpa [#allocation5 + $0x1], 0 }
   0x5   :  { %17 = vsyncpa [#allocation10], 0  ;;  %s1487_s15 = smov 0   ;;  %s1489_s16 = smov 0  }
   0x6   :  { %s1491_s17 = smov 0   ;;  %s1493_s18 = smov 0  }
   0x7 LB: > { %s1508_s19 = sadd.s32 4294967295, %s1448_s18   ;;  %s974_s20 = sadd.s32 4294967294, %s1448_s18   ;;  %s1448_s18 = sphi %s1493_s18, %s1956_s18   ;;  %s1444_s17 = sphi %s1491_s17, %s1955_s17   ;;  %s1440_s16 = sphi %s1489_s16, %s1954_s16   ;;  %s1436_s15 = sphi %s1487_s15, %s1953_s15  }
   0x8   : > { %p43_p0 = scmp.ne.s32.totalorder %s1440_s16, %s1436_s15  ;;  %p1930_p1 = scmp.eq.s32.totalorder %s1508_s19, 0 }
   0x9   : > { %p115_p3 = scmp.eq.s32.totalorder %s974_s20, 1  ;;  %p975_p5 = scmp.ge.s32.totalorder %s1448_s18, 1 }
   0xa   : > { %p1517_p4 = por %p1930_p1, %p43_p0  ;;  %p143_p7 = scmp.lt.s32.totalorder %s1448_s18, 3 }
   0xb   : > { %p1522_p6 = por %p115_p3, %p43_p0  ;;  %s1450_s24 = smov [#allocation6]  }
   0xc   : > { %s1934_s21 = scalar_select %p1517_p4, 1, 0 }
   0xd   : > { %s1935_s22 = scalar_select %p1522_p6, 1, 0 }
   0xe   : > { %p1528_p9 = pnand %p975_p5, %p143_p7  ;;  %s155_s25 = sshll.u32 %s1450_s24, 4  ;;  %s156_s25 = int_to_ptr.vmem [resolvable:$true] %s155_s25 }
   0xf   : > { %s1542_s27 = sadd.s32 1, %s1448_s18   ;;  %s30_s28 = sadd.s32 1, %s1444_s17 }
  0x10   : > { %s1936_s23 = scalar_select %p1528_p9, 1, 0 }
  0x11   : > { %p1166_p10 = pneg %p1528_p9  ;;  %s27_s29 = ssub.s32 %s1448_s18, %s1542_s27 }
  0x12   : > { %s1309_s30 = scalar_lea.vmem %s156_s25, 3072  ;;  %p1317_p7 = scmp.lt.s32.totalorder %s156_s25, %s156_s25 }
  0x13   : > { %p1537_p12 = pnand %p1166_p10, %p1930_p1  ;;  %p1310_p0 = scmp.ne.s32.totalorder %s156_s25, %s1309_s30 }
  0x14   : > { %p1318_p8 = scmp.lt.s32.totalorder %s1309_s30, %s1309_s30 }
  0x15   : > { %p1300_p13 = pneg %p1537_p12 }
  0x16   : > { %p1319_p11 = por %p1318_p8, %p1317_p7 }
  0x17   : > { %p1312_p3 = pnand %p1310_p0, %p1300_p13 }
  0x19   : > { %p1313_p5 = pneg %p1312_p3 }
  0x1b   : > { %p1320_p2 = pnand %p1319_p11, %p1313_p5 }
  0x1d   : > { %1323 = shalt.err (!%p1320_p2)
}
  0x1e   : > { %s1451_s5 = smov 192   ;;  %s1452_s6 = smov 12  }
  0x1f   : > { %1169 = dma.hbm_to_vmem [thread:$0]  (!%p1537_p12), %s1926_s1, 3072, %s156_s25, [#allocation7], %s1451_s5, %s1451_s5, %s1452_s6  }
  0x20   : > { %p28_p2 = scmp.eq.s32.totalorder %s27_s29, 0  ;;  %p37_p8 = scmp.ne.s32.totalorder %s1444_s17, %s1440_s16 }
  0x21   : > { %p38_p10 = scmp.eq.s32.totalorder %s1448_s18, 0  ;;  %p1179_p11 = scmp.lt.s32.totalorder %s1448_s18, 2 }
  0x22   : > { %s1562_s9 = scalar_select %p28_p2, %s1444_s17, %s30_s28  }
  0x23   : > { %p39_p13 = por %p38_p10, %p37_p8  ;;  %p1938_p0 = scmp.eq.s32.totalorder %s1508_s19, 1 }
  0x24   : > { %s172_s11 = sand.u32 1, %s1444_s17   ;;  %s1152_s12 = smul.u32 768, %s1448_s18 }
  0x25   : > { %p1566_p3 = por %p1938_p0, %p37_p8  ;;  %s1151_s13 = smul.u32 48, %s172_s11 }
  0x26   : > { %p1572_p5 = pnand %p1179_p11, %p39_p13  ;;  %s1579_s25 = scalar_lea.hbm %s1925_s0, %s1152_s12 }
  0x27   : > { %s1939_s10 = scalar_select %p1566_p3, 1, 0 }
  0x28   : > { %s176_s26 = scalar_lea.vmem [#allocation3], %s1151_s13  ;;  %s1583_s29 = scalar_lea.sflag [#allocation4], %s172_s11 }
  0x29   : > { %s184_s28 = sshll.u32 %s176_s26, 4  ;;  %s1324_s30 = scalar_lea.hbm %s1579_s25, 768  ;;  %s1581_s28 = int_to_ptr.vmem [resolvable:$true] %s184_s28 }
  0x2a   : > { %p1325_p12 = scmp.ne.s32.totalorder %s1579_s25, %s1324_s30  ;;  %p1326_p7 = pneg %p1572_p5 }
  0x2b   : > { %s1329_s12 = scalar_lea.hbm %s1925_s0, 1536  ;;  %p1330_p10 = scmp.lt.s32.totalorder %s1579_s25, %s1925_s0 }
  0x2c   : > { %p1327_p2 = pnand %p1326_p7, %p1325_p12  ;;  %p1331_p11 = scmp.lt.s32.totalorder %s1329_s12, %s1324_s30 }
  0x2e   : > { %p1328_p8 = pneg %p1327_p2  ;;  %p1332_p13 = por %p1331_p11, %p1330_p10 }
  0x30   : > { %p1333_p0 = pnand %p1332_p13, %p1328_p8 }
  0x32   : > { %1336 = shalt.err (!%p1333_p0)
}
  0x33   : > { %s1337_s11 = scalar_lea.vmem %s1581_s28, 768  ;;  %s1453_s13 = smov [#allocation3]  }
  0x34   : > { %p1338_p1 = scmp.ne.s32.totalorder %s1581_s28, %s1337_s11  ;;  %s1342_s26 = sshll.u32 %s1453_s13, 4  ;;  %s1343_s26 = int_to_ptr.vmem [resolvable:$false] %s1342_s26 }
  0x35   : > { %s1344_s7 = scalar_lea.vmem %s1343_s26, 1536  ;;  %p1345_p2 = scmp.lt.s32.totalorder %s1581_s28, %s1343_s26 }
  0x36   : > { %p1340_p6 = pnand %p1338_p1, %p1326_p7  ;;  %p1346_p3 = scmp.lt.s32.totalorder %s1344_s7, %s1337_s11 }
  0x38   : > { %p1341_p12 = pneg %p1340_p6  ;;  %p1347_p4 = por %p1346_p3, %p1345_p2 }
  0x3a   : > { %p1348_p9 = pnand %p1347_p4, %p1341_p12 }
  0x3c   : > { %1351 = shalt.err (!%p1348_p9)
}
  0x3d   : > { %1173 = dma.hbm_to_vmem [thread:$0]  (!%p1572_p5), %s1579_s25, 768, %s1581_s28, %s1583_s29, %s1451_s5, %s1451_s5, %s1452_s6  }
  0x3e   : > { %p1941_p1 = scmp.ne.s32.totalorder %s1936_s23, 0 }
  0x3f   : > { %s1610_s30 = sand.u32 (!%p1941_p1), 1, %s1440_s16   ;;  %p1942_p4 = scmp.ne.s32.totalorder (!%p1941_p1), %s1934_s21, 0 }
  0x40   : > { %196 = sbr.rel (%p1941_p1) target bundleno = 1150 (0x47e), region = 32  ;;  %s199_s12 = scalar_lea.sflag (!%p1941_p1), [#allocation4], %s1610_s30 }
  0x41   : > { %s1153_s8 = smul.u32 (!%p1941_p1), 48, %s1610_s30 }
  0x43   : > { %s1614_s20 = scalar_lea.vmem (!%p1941_p1), [#allocation3], %s1153_s8 }
  0x45   : > { %1419 = dma.done.wait (%p1942_p4), %s199_s12, 768  }
  0x46   : > { %1421 = vsyncadd (%p1942_p4), %s199_s12, 4294966528  ;;  %p1943_p6 = scmp.eq.s32.totalorder %s1508_s19, 0 }
  0x48   : > { %1423 = dma.done.wait (%p1943_p6), [#allocation7], 3072   ;;  %p1944_p9 = pmov %p1943_p6 }
  0x49   : > { %s983_s23 = sshll.u32 %s1610_s30, 5  ;;  %p1945_p3 = scmp.ne.s32.totalorder %s1508_s19, 0 }
  0x4a   : > { %1425 = vsyncadd (%p1944_p9), [#allocation7], 4294964224  ;;  %s1625_s5 = scalar_lea.vmem [#allocation8], %s983_s23 }
  0x4b   : > { %237 = sbr.rel (%p1945_p3) target bundleno = 82 (0x52), region = 44 }
  0x50   : > { %v1454_v0 = vmov 0.0  }
  0x51   : > { %238 = vst [vmem:[#allocation2] sm:$0xff] %v1454_v0 }
  0x52 PF: > { %v1629_v1 = vld [vmem:[#allocation6 + $0xac] ss:$12 sps:$4 sm:$0xff]   ;;  %v1631_v2 = vld [vmem:[#allocation6 + $0xa8] ss:$12 sps:$4 sm:$0xff]   ;;  %v1455_v3 = vmov 0.0   ;;  %v1456_v4 = vmov 0  }
  0x53   : > { %1071 = vmatprep.subr.bf16.mxu1 %v1455_v3  ;;  %445 = vmatprep.mubr.bf16.mxu0 %v1456_v4  ;;  %v1636_v5 = vld [vmem:[#allocation6 + $0x94] ss:$12 sps:$4 sm:$0xff]   ;;  %vm1457_vm0 = vmmov 0   ;;  %v1641_v6 = vld [vmem:[#allocation6 + $0x90] ss:$12 sps:$4 sm:$0xff]   ;;  %s1034_s14 = sshll.u32 %s1508_s19, 9 }
  0x54   : > { %413 = vmatprep.subr.bf16.mxu0 %v1629_v1  ;;  %1087 = vmatprep.mubr.msk.bf16.mxu1 %vm1457_vm0, %v1455_v3  ;;  %v1644_v7 = vld [vmem:[#allocation6 + $0x7c] ss:$12 sps:$4 sm:$0xff]   ;;  %v1647_v8 = vld [vmem:[#allocation6 + $0x78] ss:$12 sps:$4 sm:$0xff]   ;;  %v1655_v11 = vld [vmem:[#allocation6 + $0x60] ss:$12 sps:$4 sm:$0xff]   ;;  %s1861_s13 = scalar_lea.hbm %s1928_s3, %s1034_s14 }
  0x55   : > { %414 = vmatpush1.bf16.msra.mxu0 %v1631_v2  ;;  %v1650_v9 = vld [vmem:[#allocation6 + $0x64] ss:$12 sps:$4 sm:$0xff]   ;;  %v1658_v12 = vld [vmem:[#allocation6 + $0x4c] ss:$12 sps:$4 sm:$0xff]   ;;  %v1664_v14 = vld [vmem:[#allocation6 + $0x48] ss:$12 sps:$4 sm:$0xff]  }
  0x56   : > { %415 = vmatprep.subr.bf16.mxu0 %v1636_v5  ;;  %v1652_v10 = vld [vmem:[#allocation6 + $0xb0] ss:$12 sps:$4 sm:$0xff]   ;;  %v1661_v13 = vld [vmem:[#allocation6 + $0x98] ss:$12 sps:$4 sm:$0xff]   ;;  %v1667_v15 = vld [vmem:[#allocation6 + $0x34] ss:$12 sps:$4 sm:$0xff]  }
  0x57   : > { %1072 = vmatpush3.bf16.msra.mxu1 %v1652_v10  ;;  %v1671_v16 = vld [vmem:[#allocation6 + $0x80] ss:$12 sps:$4 sm:$0xff]   ;;  %v1675_v17 = vld [vmem:[#allocation6 + $0x30] ss:$12 sps:$4 sm:$0xff]   ;;  %v1681_v19 = vld [vmem:[#allocation6 + $0x68] ss:$12 sps:$4 sm:$0xff]  }
  0x58   : > { %1073 = vmatprep.subr.bf16.mxu1 %v1455_v3  ;;  %v1678_v18 = vld [vmem:[#allocation6 + $0x1c] ss:$12 sps:$4 sm:$0xff]   ;;  %v1685_v20 = vld [vmem:[#allocation6 + $0x18] ss:$12 sps:$4 sm:$0xff]   ;;  %v1695_v23 = vld [vmem:[#allocation6] ss:$12 sps:$4 sm:$0xff]  }
  0x59   : > { %416 = vmatpush1.bf16.msra.mxu0 %v1641_v6  ;;  %v1688_v21 = vld [vmem:[#allocation6 + $0x4] ss:$12 sps:$4 sm:$0xff]   ;;  %v1697_v24 = vld [vmem:[#allocation2] sm:$0xff]  ;;  %v1708_v27 = vld [vmem:[#allocation6 + $0x20] ss:$12 sps:$4 sm:$0xff]   ;;  %s869_s25 = sshll.u32 %s1625_s5, 4  ;;  %s1863_s25 = int_to_ptr.vmem [resolvable:$true] %s869_s25 }
  0x5a   : > { %417 = vmatprep.subr.bf16.mxu0 %v1644_v7  ;;  %v1691_v22 = vld [vmem:[#allocation6 + $0x50] ss:$12 sps:$4 sm:$0xff]   ;;  %v1701_v25 = vld [vmem:[#allocation6 + $0x38] ss:$12 sps:$4 sm:$0xff]   ;;  %v284_v26 = vpack.c.bf16 %v1697_v24, %v1697_v24  ;;  %v1715_v28 = vld [vmem:[#allocation6 + $0x8] ss:$12 sps:$4 sm:$0xff]  }
  0x5b   : > { %1074 = vmatpush3.bf16.msra.mxu1 %v1661_v13  ;;  %v279_v29 = vld [vmem:[%s1614_s20] sm:$0xff]  ;;  %v1757_v47 = vld [vmem:[%s1927_s2] ss:$0 sm:$0xff]  ;;  %v1012_v62 = vld [vmem:[%s1614_s20 + $0xc] sm:$0xff]  ;;  %s1458_s28 = smov [#allocation9]   ;;  %s856_s26 = scalar_lea.sflag [#allocation5], %s1610_s30 }
  0x5c   : > { %1075 = vmatprep.subr.bf16.mxu1 %v1455_v3  ;;  %v281_v30 = vunpack.c.l.bf16 %v279_v29  ;;  %v282_v35 = vunpack.c.h.bf16 %v279_v29  ;;  %v1760_v48 = vld [vmem:[%s1614_s20 + $0x8] ss:$12 sps:$4 sm:$0xff]   ;;  %v520_v63 = vunpack.c.l.bf16 %v1012_v62  ;;  %s883_s29 = sshll.u32 %s1458_s28, 4  ;;  %s1352_s7 = scalar_lea.vmem %s1863_s25, 512  ;;  %s1865_s29 = int_to_ptr.vmem [resolvable:$true] %s883_s29 }
  0x5d   : > { %418 = vmatpush1.bf16.msra.mxu0 %v1647_v8  ;;  %v283_v51 = vunpack.c.l.bf16 %v1760_v48  ;;  %p1353_p5 = scmp.ne.s32.totalorder %s1863_s25, %s1352_s7  ;;  %p1946_p7 = scmp.ne.s32.totalorder %s1939_s10, 0 }
  0x5e   : > { %419 = vmatprep.subr.bf16.mxu0 %v1650_v9  ;;  %s1459_s8 = smov [#allocation8]  }
  0x5f   : > { %1076 = vmatpush3.bf16.msra.mxu1 %v1671_v16  ;;  %p1354_p8 = pnand %p1353_p5, %p1946_p7  ;;  %s1356_s12 = sshll.u32 %s1459_s8, 4  ;;  %s1357_s12 = int_to_ptr.vmem [resolvable:$false] %s1356_s12 }
  0x60   : > { %1077 = vmatprep.subr.bf16.mxu1 %v1455_v3  ;;  %p1359_p11 = scmp.lt.s32.totalorder %s1863_s25, %s1357_s12 }
  0x61   : > { %420 = vmatpush1.bf16.msra.mxu0 %v1655_v11  ;;  %p1355_p10 = pneg %p1354_p8 }
  0x62   : > { %421 = vmatprep.subr.bf16.mxu0 %v1658_v12 }
  0x63   : > { %1078 = vmatpush3.bf16.msra.mxu1 %v1681_v19 }
  0x64   : > { %1079 = vmatprep.subr.bf16.mxu1 %v1455_v3 }
  0x65   : > { %422 = vmatpush1.bf16.msra.mxu0 %v1664_v14 }
  0x66   : > { %423 = vmatprep.subr.bf16.mxu0 %v1667_v15 }
  0x67   : > { %1080 = vmatpush3.bf16.msra.mxu1 %v1691_v22 }
  0x68   : > { %1081 = vmatprep.subr.bf16.mxu1 %v1455_v3 }
  0x69   : > { %424 = vmatpush1.bf16.msra.mxu0 %v1675_v17 }
  0x6a   : > { %425 = vmatprep.subr.bf16.mxu0 %v1678_v18 }
  0x6b   : > { %1082 = vmatpush3.bf16.msra.mxu1 %v1701_v25 }
  0x6c   : > { %1083 = vmatprep.subr.bf16.mxu1 %v1455_v3 }
  0x6d   : > { %426 = vmatpush1.bf16.msra.mxu0 %v1685_v20 }
  0x6e   : > { %427 = vmatprep.subr.bf16.mxu0 %v1688_v21 }
  0x6f   : > { %1084 = vmatpush3.bf16.msra.mxu1 %v1708_v27 }
  0x70   : > { %1085 = vmatprep.subr.bf16.mxu1 %v1455_v3 }
  0x71   : > { %428 = vmatpush1.bf16.msra.mxu0 %v1695_v23 }
  0x72   : > { %524 = vmatprep.subr.bf16.mxu0 %v1629_v1 }
  0x73   : > { %1086 = vmatpush3.bf16.msra.mxu1 %v1715_v28 }
  0x74   : > { %446 = vmatmul.mubr.bf16.vlgmr.msra.gmra.mxu0 %v284_v26  ;;  %1091 = vmatprep.subr.bf16.mxu1 %v1455_v3 }
  0x75   : > { %525 = vmatpush1.bf16.msra.mxu0 %v1631_v2  ;;  %556 = vmatprep.mubr.bf16.mxu0 %v1456_v4 }
  0x76   : > { %526 = vmatprep.subr.bf16.mxu0 %v1636_v5  ;;  %1088 = vmatmul.mubr.bf16.vlgmr.msra.gmra.mxu1 %v284_v26 }
  0x77   : > { %1092 = vmatpush3.bf16.msra.mxu1 %v1652_v10  ;;  %1107 = vmatprep.mubr.msk.bf16.mxu1 %vm1457_vm0, %v1455_v3 }
  0x78   : > { %1093 = vmatprep.subr.bf16.mxu1 %v1455_v3 }
  0x79   : > { %527 = vmatpush1.bf16.msra.mxu0 %v1641_v6 }
  0x7a   : > { %528 = vmatprep.subr.bf16.mxu0 %v1644_v7 }
  0x7b   : > { %1094 = vmatpush3.bf16.msra.mxu1 %v1661_v13 }
  0x7c   : > { %1095 = vmatprep.subr.bf16.mxu1 %v1455_v3 }
  0x7d   : > { %529 = vmatpush1.bf16.msra.mxu0 %v1647_v8 }
  0x7e   : > { %530 = vmatprep.subr.bf16.mxu0 %v1650_v9 }
  0x7f   : > { %1096 = vmatpush3.bf16.msra.mxu1 %v1671_v16 }
  0x80   : > { %1097 = vmatprep.subr.bf16.mxu1 %v1455_v3 }
  0x81   : > { %531 = vmatpush1.bf16.msra.mxu0 %v1655_v11 }
  0x82   : > { %532 = vmatprep.subr.bf16.mxu0 %v1658_v12 }
  0x83   : > { %1098 = vmatpush3.bf16.msra.mxu1 %v1681_v19 }
  0x84   : > { %1099 = vmatprep.subr.bf16.mxu1 %v1455_v3 }
  0x85   : > { %533 = vmatpush1.bf16.msra.mxu0 %v1664_v14 }
  0x86   : > { %534 = vmatprep.subr.bf16.mxu0 %v1667_v15 }
  0x87   : > { %1100 = vmatpush3.bf16.msra.mxu1 %v1691_v22 }
  0x88   : > { %1101 = vmatprep.subr.bf16.mxu1 %v1455_v3 }
  0x89   : > { %535 = vmatpush1.bf16.msra.mxu0 %v1675_v17 }
  0x8a   : > { %536 = vmatprep.subr.bf16.mxu0 %v1678_v18 }
  0x8b   : > { %1102 = vmatpush3.bf16.msra.mxu1 %v1701_v25 }
  0x8c   : > { %1103 = vmatprep.subr.bf16.mxu1 %v1455_v3 }
  0x8d   : > { %537 = vmatpush1.bf16.msra.mxu0 %v1685_v20 }
  0x8e   : > { %538 = vmatprep.subr.bf16.mxu0 %v1688_v21 }
  0x8f   : > { %1104 = vmatpush3.bf16.msra.mxu1 %v1708_v27 }
  0x90   : > { %1105 = vmatprep.subr.bf16.mxu1 %v1455_v3 }
  0x91   : > { %539 = vmatpush1.bf16.msra.mxu0 %v1695_v23 }
  0x92   : > { %636 = vmatprep.subr.bf16.mxu0 %v1629_v1 }
  0x93   : > { %1106 = vmatpush3.bf16.msra.mxu1 %v1715_v28 }
  0x94   : > { %1111 = vmatprep.subr.bf16.mxu1 %v1455_v3 }
 0x134   : > { %v447_v31 = vpop.f32.mrf.mxu0 }
 0x135   : > { %v494_v32 = vadd.f32 %v447_v31, %v281_v30 }
 0x136   : > { %v449_v33 = vpop.f32.mrf.mxu0  ;;  %v488_v39 = vpop.f32.mrf.mxu1 }
 0x137   : > { %v1010_v34 = vmul.f32 -1.442695, %v494_v32  ;;  %v501_v38 = vadd.f32 %v449_v33, %v282_v35  ;;  %v508_v50 = vadd.f32 %v1757_v47, %v488_v39  ;;  %v521_v32 = vunpack.c.h.bf16 %v1012_v62  ;;  %v1022_v62 = vld [vmem:[%s1614_s20 + $0x24] sm:$0xff] }
 0x138   : > { %v451_v36 = vpop.f32.mrf.mxu0  ;;  %v1089_v41 = vpop.f32.mrf.mxu1 }
 0x139   : > { %1258 = vpow2.f32 %v1010_v34  ;;  %v1011_v40 = vmul.f32 -1.442695, %v501_v38 }
 0x13a   : > { %v452_v37 = vpop.f32.mrf.mxu0  ;;  %v491_v42 = vpop.f32.mrf.mxu1 }
 0x13b   : > { %1260 = vpow2.f32 %v1011_v40  ;;  %v522_v42 = vunpack.c.h.bf16 %v1760_v48 }
 0x13c   : > { %v1090_v43 = vpop.f32.mrf.mxu1 }
 0x146   : > { %v1259_v44 = vpop.eup %1258 }
 0x147   : > { %v498_v45 = vadd.f32 1.0, %v1259_v44 }
 0x148   : > { %v1261_v46 = vpop.eup %1260 }
 0x149   : > { %1262 = vrcp.f32 %v498_v45  ;;  %v505_v49 = vadd.f32 1.0, %v1261_v46 }
 0x14b   : > { %1264 = vrcp.f32 %v505_v49 }
 0x156   : > { %v1263_v52 = vpop.eup %1262 }
 0x157   : > { %v509_v53 = vmul.f32 %v1263_v52, %v508_v50 }
 0x158   : > { %v1265_v55 = vpop.eup %1264 }
 0x159   : > { %v510_v54 = vadd.f32 %v509_v53, %v283_v51  ;;  %v512_v56 = vsub.f32 1.0, %v1265_v55  ;;  %v514_v59 = vmul.f32 %v1265_v55, %v1697_v24 }
 0x15b   : > { %1266 = vtanh.f32 %v510_v54 }
 0x168   : > { %v1267_v57 = vpop.eup %1266 }
 0x169   : > { %v513_v58 = vmul.f32 %v1267_v57, %v512_v56 }
 0x16b   : > { %v1765_v60 = vadd.f32 %v514_v59, %v513_v58 }
 0x16d   : > { %516 = vst [vmem:[%s1625_s5] sm:$0xff] %v1765_v60  ;;  %v523_v61 = vpack.c.bf16 %v1765_v60, %v1765_v60 }
 0x16f   : > { %557 = vmatmul.mubr.bf16.vlgmr.msra.gmra.mxu0 %v523_v61  ;;  %1108 = vmatmul.mubr.bf16.vlgmr.msra.gmra.mxu1 %v523_v61 }
 0x170   : > { %637 = vmatpush1.bf16.msra.mxu0 %v1631_v2  ;;  %1112 = vmatpush3.bf16.msra.mxu1 %v1652_v10 }
 0x171   : > { %638 = vmatprep.subr.bf16.mxu0 %v1636_v5  ;;  %1113 = vmatprep.subr.bf16.mxu1 %v1455_v3 }
 0x172   : > { %668 = vmatprep.mubr.bf16.mxu0 %v1456_v4  ;;  %1127 = vmatprep.mubr.msk.bf16.mxu1 %vm1457_vm0, %v1455_v3 }
 0x174   : > { %639 = vmatpush1.bf16.msra.mxu0 %v1641_v6  ;;  %1114 = vmatpush3.bf16.msra.mxu1 %v1661_v13 }
 0x175   : > { %640 = vmatprep.subr.bf16.mxu0 %v1644_v7  ;;  %1115 = vmatprep.subr.bf16.mxu1 %v1455_v3 }
 0x178   : > { %641 = vmatpush1.bf16.msra.mxu0 %v1647_v8  ;;  %1116 = vmatpush3.bf16.msra.mxu1 %v1671_v16 }
 0x179   : > { %642 = vmatprep.subr.bf16.mxu0 %v1650_v9  ;;  %1117 = vmatprep.subr.bf16.mxu1 %v1455_v3 }
 0x17c   : > { %643 = vmatpush1.bf16.msra.mxu0 %v1655_v11  ;;  %1118 = vmatpush3.bf16.msra.mxu1 %v1681_v19 }
 0x17d   : > { %644 = vmatprep.subr.bf16.mxu0 %v1658_v12  ;;  %1119 = vmatprep.subr.bf16.mxu1 %v1455_v3 }
 0x180   : > { %645 = vmatpush1.bf16.msra.mxu0 %v1664_v14  ;;  %1120 = vmatpush3.bf16.msra.mxu1 %v1691_v22 }
 0x181   : > { %646 = vmatprep.subr.bf16.mxu0 %v1667_v15  ;;  %1121 = vmatprep.subr.bf16.mxu1 %v1455_v3 }
 0x184   : > { %647 = vmatpush1.bf16.msra.mxu0 %v1675_v17  ;;  %1122 = vmatpush3.bf16.msra.mxu1 %v1701_v25 }
 0x185   : > { %648 = vmatprep.subr.bf16.mxu0 %v1678_v18  ;;  %1123 = vmatprep.subr.bf16.mxu1 %v1455_v3 }
 0x188   : > { %649 = vmatpush1.bf16.msra.mxu0 %v1685_v20  ;;  %1124 = vmatpush3.bf16.msra.mxu1 %v1708_v27 }
 0x189   : > { %650 = vmatprep.subr.bf16.mxu0 %v1688_v21  ;;  %1125 = vmatprep.subr.bf16.mxu1 %v1455_v3 }
 0x18c   : > { %651 = vmatpush1.bf16.msra.mxu0 %v1695_v23  ;;  %1126 = vmatpush3.bf16.msra.mxu1 %v1715_v28 }
 0x18d   : > { %748 = vmatprep.subr.bf16.mxu0 %v1629_v1  ;;  %1131 = vmatprep.subr.bf16.mxu1 %v1455_v3 }
 0x22f   : > { %v558_v0 = vpop.f32.mrf.mxu0  ;;  %v599_v24 = vpop.f32.mrf.mxu1 }
 0x230   : > { %v605_v26 = vadd.f32 %v558_v0, %v520_v63  ;;  %v619_v43 = vadd.f32 %v1757_v47, %v599_v24  ;;  %v744_v63 = vunpack.c.l.bf16 %v1022_v62 }
 0x231   : > { %v560_v29 = vpop.f32.mrf.mxu0  ;;  %v1109_v30 = vpop.f32.mrf.mxu1 }
 0x232   : > { %v1014_v31 = vmul.f32 -1.442695, %v605_v26  ;;  %v612_v37 = vadd.f32 %v560_v29, %v521_v32  ;;  %v745_v32 = vunpack.c.h.bf16 %v1022_v62 }
 0x233   : > { %v562_v33 = vpop.f32.mrf.mxu0  ;;  %v602_v34 = vpop.f32.mrf.mxu1 }
 0x234   : > { %1268 = vpow2.f32 %v1014_v31  ;;  %v1015_v38 = vmul.f32 -1.442695, %v612_v37 }
 0x235   : > { %v563_v35 = vpop.f32.mrf.mxu0  ;;  %v1110_v36 = vpop.f32.mrf.mxu1 }
 0x236   : > { %1270 = vpow2.f32 %v1015_v38 }
 0x241   : > { %v1269_v1 = vpop.eup %1268 }
 0x242   : > { %v609_v39 = vadd.f32 1.0, %v1269_v1 }
 0x243   : > { %v1271_v40 = vpop.eup %1270 }
 0x244   : > { %1272 = vrcp.f32 %v609_v39  ;;  %v616_v41 = vadd.f32 1.0, %v1271_v40 }
 0x246   : > { %1274 = vrcp.f32 %v616_v41 }
 0x251   : > { %v1273_v44 = vpop.eup %1272 }
 0x252   : > { %v620_v45 = vmul.f32 %v1273_v44, %v619_v43 }
 0x253   : > { %v1275_v49 = vpop.eup %1274 }
 0x254   : > { %v621_v46 = vadd.f32 %v620_v45, %v522_v42  ;;  %v623_v50 = vsub.f32 1.0, %v1275_v49  ;;  %v625_v53 = vmul.f32 %v1275_v49, %v1765_v60 }
 0x256   : > { %1276 = vtanh.f32 %v621_v46 }
 0x263   : > { %v1277_v51 = vpop.eup %1276 }
 0x264   : > { %v624_v52 = vmul.f32 %v1277_v51, %v623_v50 }
 0x266   : > { %v1810_v54 = vadd.f32 %v625_v53, %v624_v52 }
 0x268   : > { %1016 = vst [vmem:[%s1625_s5 + $0x8] sm:$0xff] %v1810_v54  ;;  %v635_v48 = vpack.c.bf16 %v1810_v54, %v1810_v54 }
 0x26a   : > { %669 = vmatmul.mubr.bf16.vlgmr.msra.gmra.mxu0 %v635_v48  ;;  %1128 = vmatmul.mubr.bf16.vlgmr.msra.gmra.mxu1 %v635_v48 }
 0x26b   : > { %749 = vmatpush1.bf16.msra.mxu0 %v1631_v2  ;;  %1132 = vmatpush3.bf16.msra.mxu1 %v1652_v10  ;;  %v1017_v2 = vld [vmem:[%s1614_s20 + $0x18] sm:$0xff] }
 0x26c   : > { %750 = vmatprep.subr.bf16.mxu0 %v1636_v5  ;;  %1133 = vmatprep.subr.bf16.mxu1 %v1455_v3 }
 0x26d   : > { %780 = vmatprep.mubr.bf16.mxu0 %v1456_v4  ;;  %1147 = vmatprep.mubr.msk.bf16.mxu1 %vm1457_vm0, %v1455_v3  ;;  %v632_v4 = vunpack.c.l.bf16 %v1017_v2 }
 0x26f   : > { %751 = vmatpush1.bf16.msra.mxu0 %v1641_v6  ;;  %1134 = vmatpush3.bf16.msra.mxu1 %v1661_v13 }
 0x270   : > { %752 = vmatprep.subr.bf16.mxu0 %v1644_v7  ;;  %1135 = vmatprep.subr.bf16.mxu1 %v1455_v3 }
 0x273   : > { %753 = vmatpush1.bf16.msra.mxu0 %v1647_v8  ;;  %1136 = vmatpush3.bf16.msra.mxu1 %v1671_v16 }
 0x274   : > { %754 = vmatprep.subr.bf16.mxu0 %v1650_v9  ;;  %1137 = vmatprep.subr.bf16.mxu1 %v1455_v3 }
 0x277   : > { %755 = vmatpush1.bf16.msra.mxu0 %v1655_v11  ;;  %1138 = vmatpush3.bf16.msra.mxu1 %v1681_v19  ;;  %v633_v11 = vunpack.c.h.bf16 %v1017_v2 }
 0x278   : > { %756 = vmatprep.subr.bf16.mxu0 %v1658_v12  ;;  %1139 = vmatprep.subr.bf16.mxu1 %v1455_v3 }
 0x27b   : > { %757 = vmatpush1.bf16.msra.mxu0 %v1664_v14  ;;  %1140 = vmatpush3.bf16.msra.mxu1 %v1691_v22 }
 0x27c   : > { %758 = vmatprep.subr.bf16.mxu0 %v1667_v15  ;;  %1141 = vmatprep.subr.bf16.mxu1 %v1455_v3 }
 0x27f   : > { %759 = vmatpush1.bf16.msra.mxu0 %v1675_v17  ;;  %1142 = vmatpush3.bf16.msra.mxu1 %v1701_v25 }
 0x280   : > { %760 = vmatprep.subr.bf16.mxu0 %v1678_v18  ;;  %1143 = vmatprep.subr.bf16.mxu1 %v1455_v3 }
 0x283   : > { %761 = vmatpush1.bf16.msra.mxu0 %v1685_v20  ;;  %1144 = vmatpush3.bf16.msra.mxu1 %v1708_v27  ;;  %v1018_v20 = vld [vmem:[%s1614_s20 + $0x20] ss:$12 sps:$4 sm:$0xff]   ;;  %s1358_s20 = scalar_lea.vmem %s1357_s12, 1024 }
 0x284   : > { %762 = vmatprep.subr.bf16.mxu0 %v1688_v21  ;;  %1145 = vmatprep.subr.bf16.mxu1 %v1455_v3  ;;  %v634_v22 = vunpack.c.l.bf16 %v1018_v20  ;;  %v746_v42 = vunpack.c.h.bf16 %v1018_v20  ;;  %p1360_p13 = scmp.lt.s32.totalorder %s1358_s20, %s1352_s7 }
 0x286   : > { %p1361_p0 = por %p1360_p13, %p1359_p11 }
 0x287   : > { %763 = vmatpush1.bf16.msra.mxu0 %v1695_v23  ;;  %1146 = vmatpush3.bf16.msra.mxu1 %v1715_v28 }
 0x288   : > { %p1362_p12 = pnand %p1361_p0, %p1355_p10 }
 0x32a   : > { %v670_v5 = vpop.f32.mrf.mxu0  ;;  %v711_v6 = vpop.f32.mrf.mxu1 }
 0x32b   : > { %v717_v7 = vadd.f32 %v670_v5, %v632_v4  ;;  %v731_v23 = vadd.f32 %v1757_v47, %v711_v6 }
 0x32c   : > { %v672_v8 = vpop.f32.mrf.mxu0  ;;  %v1129_v9 = vpop.f32.mrf.mxu1 }
 0x32d   : > { %v1019_v10 = vmul.f32 -1.442695, %v717_v7  ;;  %v724_v3 = vadd.f32 %v672_v8, %v633_v11 }
 0x32e   : > { %v674_v12 = vpop.f32.mrf.mxu0  ;;  %v714_v13 = vpop.f32.mrf.mxu1 }
 0x32f   : > { %1278 = vpow2.f32 %v1019_v10  ;;  %v1020_v16 = vmul.f32 -1.442695, %v724_v3 }
 0x330   : > { %v675_v14 = vpop.f32.mrf.mxu0  ;;  %v1130_v15 = vpop.f32.mrf.mxu1 }
 0x331   : > { %1280 = vpow2.f32 %v1020_v16 }
 0x33c   : > { %v1279_v17 = vpop.eup %1278 }
 0x33d   : > { %v721_v18 = vadd.f32 1.0, %v1279_v17 }
 0x33e   : > { %v1281_v19 = vpop.eup %1280 }
 0x33f   : > { %1282 = vrcp.f32 %v721_v18  ;;  %v728_v21 = vadd.f32 1.0, %v1281_v19 }
 0x341   : > { %1284 = vrcp.f32 %v728_v21 }
 0x34c   : > { %v1283_v25 = vpop.eup %1282 }
 0x34d   : > { %v732_v27 = vmul.f32 %v1283_v25, %v731_v23 }
 0x34e   : > { %v1285_v55 = vpop.eup %1284 }
 0x34f   : > { %v733_v28 = vadd.f32 %v732_v27, %v634_v22  ;;  %v735_v56 = vsub.f32 1.0, %v1285_v55  ;;  %v737_v59 = vmul.f32 %v1285_v55, %v1810_v54 }
 0x351   : > { %1286 = vtanh.f32 %v733_v28 }
 0x35e   : > { %v1287_v57 = vpop.eup %1286 }
 0x35f   : > { %v736_v58 = vmul.f32 %v1287_v57, %v735_v56 }
 0x361   : > { %v738_v60 = vadd.f32 %v737_v59, %v736_v58 }
 0x363   : > { %1021 = vst [vmem:[%s1625_s5 + $0x10] sm:$0xff] %v738_v60  ;;  %v747_v61 = vpack.c.bf16 %v738_v60, %v738_v60 }
 0x365   : > { %781 = vmatmul.mubr.bf16.vlgmr.msra.gmra.mxu0 %v747_v61  ;;  %1148 = vmatmul.mubr.bf16.vlgmr.msra.gmra.mxu1 %v747_v61 }
 0x425   : > { %v782_v0 = vpop.f32.mrf.mxu0  ;;  %v823_v24 = vpop.f32.mrf.mxu1 }
 0x426   : > { %v829_v26 = vadd.f32 %v782_v0, %v744_v63  ;;  %v843_v43 = vadd.f32 %v1757_v47, %v823_v24 }
 0x427   : > { %v784_v29 = vpop.f32.mrf.mxu0  ;;  %v1149_v30 = vpop.f32.mrf.mxu1 }
 0x428   : > { %v1024_v31 = vmul.f32 -1.442695, %v829_v26  ;;  %v836_v37 = vadd.f32 %v784_v29, %v745_v32 }
 0x429   : > { %v786_v33 = vpop.f32.mrf.mxu0  ;;  %v826_v34 = vpop.f32.mrf.mxu1 }
 0x42a   : > { %1288 = vpow2.f32 %v1024_v31  ;;  %v1025_v38 = vmul.f32 -1.442695, %v836_v37 }
 0x42b   : > { %v787_v35 = vpop.f32.mrf.mxu0  ;;  %v1150_v36 = vpop.f32.mrf.mxu1 }
 0x42c   : > { %1290 = vpow2.f32 %v1025_v38 }
 0x437   : > { %v1289_v1 = vpop.eup %1288 }
 0x438   : > { %v833_v39 = vadd.f32 1.0, %v1289_v1 }
 0x439   : > { %v1291_v40 = vpop.eup %1290 }
 0x43a   : > { %1292 = vrcp.f32 %v833_v39  ;;  %v840_v41 = vadd.f32 1.0, %v1291_v40 }
 0x43c   : > { %1294 = vrcp.f32 %v840_v41 }
 0x447   : > { %v1293_v44 = vpop.eup %1292 }
 0x448   : > { %v844_v45 = vmul.f32 %v1293_v44, %v843_v43 }
 0x449   : > { %v1295_v49 = vpop.eup %1294 }
 0x44a   : > { %v845_v46 = vadd.f32 %v844_v45, %v746_v42  ;;  %v847_v50 = vsub.f32 1.0, %v1295_v49  ;;  %v849_v53 = vmul.f32 %v1295_v49, %v738_v60 }
 0x44c   : > { %1296 = vtanh.f32 %v845_v46 }
 0x459   : > { %v1297_v51 = vpop.eup %1296 }
 0x45a   : > { %v848_v52 = vmul.f32 %v1297_v51, %v847_v50 }
 0x45c   : > { %v850_v47 = vadd.f32 %v849_v53, %v848_v52 }
 0x45e   : > { %853 = vst [vmem:[#allocation2] sm:$0xff] %v850_v47  ;;  %1026 = vst [vmem:[%s1625_s5 + $0x18] sm:$0xff] %v850_v47 }
 0x45f   : > { %854 = vst [vmem:[#allocation9] sm:$0xff] %v850_v47 }
 0x460   : > { %1365 = shalt.err (!%p1362_p12)
}
 0x461   : > { %s1366_s23 = scalar_lea.hbm %s1861_s13, 512  ;;  %s1370_s6 = scalar_lea.hbm %s1928_s3, 1024 }
 0x462   : > { %p1367_p2 = scmp.ne.s32.totalorder %s1861_s13, %s1366_s23  ;;  %p1371_p6 = scmp.lt.s32.totalorder %s1861_s13, %s1928_s3 }
 0x463   : > { %p1372_p9 = scmp.lt.s32.totalorder %s1370_s6, %s1366_s23 }
 0x464   : > { %p1368_p1 = pnand %p1367_p2, %p1946_p7 }
 0x465   : > { %p1373_p3 = por %p1372_p9, %p1371_p6 }
 0x466   : > { %p1369_p4 = pneg %p1368_p1 }
 0x468   : > { %p1374_p5 = pnand %p1373_p3, %p1369_p4 }
 0x46a   : > { %1377 = shalt.err (!%p1374_p5)
}
 0x46b   : > { %s1460_s24 = smov 128   ;;  %s1461_s11 = smov 8  }
 0x46c   : > { %1160 = dma.vmem_to_hbm [thread:$0]  (%p1946_p7), %s1863_s25, 512, %s1861_s13, %s856_s26, %s1460_s24, %s1460_s24, %s1461_s11  }
 0x46d   : > { %s1378_s7 = scalar_lea.vmem %s1865_s29, 128  ;;  %p1947_p10 = scmp.eq.s32.totalorder %s1508_s19, 1 }
 0x46e   : > { %p1379_p8 = scmp.ne.s32.totalorder %s1865_s29, %s1378_s7  ;;  %p1385_p0 = scmp.lt.s32.totalorder %s1865_s29, %s1865_s29 }
 0x46f   : > { %p1386_p12 = scmp.lt.s32.totalorder %s1378_s7, %s1378_s7 }
 0x470   : > { %p1380_p11 = pnand %p1379_p8, %p1947_p10 }
 0x471   : > { %p1387_p2 = por %p1386_p12, %p1385_p0 }
 0x472   : > { %p1381_p13 = pneg %p1380_p11 }
 0x474   : > { %p1388_p1 = pnand %p1387_p2, %p1381_p13 }
 0x476   : > { %1391 = shalt.err (!%p1388_p1)
}
 0x477   : > { %p1948_p4 = pmov %p1947_p10 }
 0x479   : > { %1162 = dma.vmem_to_hbm [thread:$0]  (%p1948_p4), %s1865_s29, 128, %s1929_s4, [#allocation10]  }
 0x47a   : > { %p1949_p7 = pmov %p1948_p4 }
 0x47b   : > { %p1950_p6 = pmov %p1948_p4 }
 0x47c   : > { %1427 = dma.done.wait (%p1949_p7), [#allocation10], 128  }
 0x47d   : > { %1429 = vsyncadd (%p1950_p6), [#allocation10], 4294967168 }
 0x47e PF: > { %s899_s10 = sand.u32 1, %s1436_s15   ;;  %p1951_p9 = scmp.ne.s32.totalorder %s1935_s22, 0 }
 0x47f   : > { %p1952_p3 = scmp.ge.s32.totalorder %s1448_s18, 2  ;;  %s900_s30 = scalar_lea.sflag [#allocation5], %s899_s10 }
 0x481   : > { %p1175_p5 = pnand %p1952_p3, %p1951_p9 }
 0x483   : > { %p1176_p8 = pneg %p1175_p5 }
 0x485   : > { %1431 = dma.done.wait (%p1176_p8), %s900_s30, 512  }
 0x486   : > { %1433 = vsyncadd (%p1176_p8), %s900_s30, 4294966784  ;;  %p20_p10 = scmp.ge.s32.totalorder %s1542_s27, 4   ;;  %s1953_s15 = smov %s1440_s16 }
 0x487   : > { %s1954_s16 = smov %s1444_s17  ;;  %s1955_s17 = smov %s1562_s9 }
 0x488   : > { %s1956_s18 = smov %s1542_s27  ;;  %22 = sbr.rel (!%p20_p10) target bundleno = 7 (0x7), region = 99 }
 0x48d   :  { %905 = vsyncpa [#allocation4], 1 }
 0x48e   :  { %907 = vsyncpa [#allocation4 + $0x1], 1 }
 0x48f   :  { %908 = vsyncpa [#allocation7], 1 }
 0x490   :  { %909 = vsyncpa [#allocation5], 1 }
 0x491   :  { %911 = vsyncpa [#allocation5 + $0x1], 1 }
 0x492   :  { %912 = vsyncpa [#allocation10], 1 }

</bundles_post_ra>
